<compile_context>
chip_gen: v7x
topology: tpu7x:2x2x1
jax: 0.10.0
libtpu: 0.0.40
codegen_flags: <defaults>
</compile_context>

<pallas_src>
import functools

import jax
import jax.numpy as jnp
from jax.experimental import pallas as pl
from jax.experimental.pallas import tpu as pltpu


def _cdiv(a, b):
    return (a + b - 1) // b


def _round_up(x, m):
    return (x + m - 1) // m * m


def _round_down(x, m):
    return x // m * m


def _auto_budget():
    """(per-input block byte budget, vmem_limit_bytes), generation-aware."""
    try:
        cap = int(pltpu.get_tpu_info().vmem_capacity_bytes)
    except Exception:  # unknown part -> assume the small (v7x, 64 MiB) VMEM
        cap = 64 * 1024 * 1024
    if cap >= 96 * 1024 * 1024:      # v5e / v6e: 128 MiB VMEM
        return 8 * 1024 * 1024, 64 * 1024 * 1024
    # v7x: 64 MiB VMEM -> 2 inputs x 2 buffers x 4 MiB = 16 MiB footprint.
    return 4 * 1024 * 1024, 40 * 1024 * 1024


def _pick_tiling(rows, cols, itemsize, block_bytes):
    """Dtype-aware tile sizes + grid split so both TensorCores get work."""
    sub_mult = max(8, 32 // max(itemsize, 1))    # f32: 8, bf16: 16, int8: 32

    # Column (spatial) block: full extent if a sub_mult-row block fits the
    # budget (block dim == array dim needs no 128-alignment -> no padding);
    # otherwise the largest 128-multiple that fits.
    if cols * sub_mult * itemsize <= block_bytes:
        c_blk = cols
    else:
        c_blk = max(128, _round_down(block_bytes // (sub_mult * itemsize), 128))
    cb_total = _cdiv(cols, c_blk)

    # Row ((n, c)) block: as many rows as fit; prefer >= 2 row blocks so the
    # "parallel" axis can feed both v7x TensorCores.
    r_fit = max(sub_mult, _round_down(block_bytes // (c_blk * itemsize), sub_mult))
    if r_fit >= rows:
        r_blk = rows
        if rows >= 2 * sub_mult:
            half = _round_up(_cdiv(rows, 2), sub_mult)
            if half < rows:
                r_blk = half
    else:
        r_blk = r_fit
    rb_total = _cdiv(rows, r_blk)

    # If (n, c) collapses to a single row block, split the spatial reduction
    # in two (partial outputs combined in the glue) so both cores still work.
    n_split = 2 if (rb_total == 1 and cb_total >= 2) else 1
    cb_per_split = _cdiv(cb_total, n_split)
    return r_blk, c_blk, rb_total, cb_total, n_split, cb_per_split


def _reg_loss_kernel(last_ref, logits_ref, out_ref,
                     inter_acc, denom_acc, fsum_acc, *,
                     hard, gamma, rows, cols, cb_per_split,
                     mask_rows, mask_cols):
    j = pl.program_id(2)                         # spatial (reduction) axis

    @pl.when(j == 0)
    def _():
        inter_acc[...] = jnp.zeros_like(inter_acc)
        denom_acc[...] = jnp.zeros_like(denom_acc)
        fsum_acc[...] = jnp.zeros_like(fsum_acc)

    x = last_ref[...].astype(jnp.float32)        # (r_blk, c_blk) last_logits
    y = logits_ref[...].astype(jnp.float32)      # (r_blk, c_blk) logits
    r_blk, c_blk = x.shape

    # Ragged-tail masking (compile-time gated; absent when tiles divide).
    mask = None
    if mask_cols:
        # Unclamped global column offset: duplicate (split-overhang) and
        # ragged tiles mask to an exactly-zero contribution.
        col0 = (pl.program_id(0) * cb_per_split + j) * c_blk
        lane = jax.lax.broadcasted_iota(jnp.int32, x.shape, 1)
        mask = (lane + col0) < cols
    if mask_rows:
        row0 = pl.program_id(1) * r_blk
        sub = jax.lax.broadcasted_iota(jnp.int32, x.shape, 0)
        rmask = (sub + row0) < rows
        mask = rmask if mask is None else jnp.logical_and(mask, rmask)
    if mask is not None:
        # Zeroed logits + zeroed prob make every per-element summand
        # (intersection, denominator, focal) contribute exactly 0.
        x = jnp.where(mask, x, 0.0)
        y = jnp.where(mask, y, 0.0)

    prob = jax.nn.sigmoid(x)                     # last_prob
    if hard:
        # (sigmoid(y) > 0.5) == (y > 0): saves one transcendental / element.
        target = (y > 0.0).astype(jnp.float32)
    else:
        target = jax.nn.sigmoid(y)
    if mask is not None:
        prob = jnp.where(mask, prob, 0.0)
        if not hard:
            target = jnp.where(mask, target, 0.0)

    # Per-row (== per (n, c)) partial sums over this spatial block.
    inter_acc[...] += jnp.sum(prob * target, axis=1, keepdims=True)
    denom_acc[...] += jnp.sum(prob + target, axis=1, keepdims=True)  # sum_p+sum_t fused

    # Sigmoid focal loss per element, partial spatial sum.
    # bce_with_logits(x, t) = max(x, 0) - x*t + log1p(exp(-|x|))
    #                       = max(x, 0) - x*t - log(max(prob, 1 - prob))
    # (reuses the sigmoid -> one fewer EUP op per element; masked rows/cols
    #  give -log(max(0, 1)) = 0 exactly).
    ce = jnp.maximum(x, 0.0) - x * target - jnp.log(jnp.maximum(prob, 1.0 - prob))
    if gamma != 0.0:
        q = 1.0 - (prob * target + (1.0 - prob) * (1.0 - target))    # 1 - p_t
        if float(gamma).is_integer() and 0 < gamma <= 4:
            w = q
            for _ in range(int(gamma) - 1):      # VPU multiplies, no EUP pow
                w = w * q
        else:
            w = jnp.power(q, gamma)
        focal = ce * w
    else:
        focal = ce
    fsum_acc[...] += jnp.sum(focal, axis=1, keepdims=True)

    @pl.when(j == pl.num_programs(2) - 1)
    def _():
        # Lane-dense (r_blk, 128) store: lanes 0/1/2 carry the three per-row
        # partials, rest zero -> single unmasked full-vreg store.
        lane = jax.lax.broadcasted_iota(jnp.int32, out_ref.shape, 1)
        out_ref[...] = jnp.where(
            lane == 0, inter_acc[...],
            jnp.where(lane == 1, denom_acc[...],
                      jnp.where(lane == 2, fsum_acc[...], 0.0)))


def adjacent_layer_reg_loss(last_logits, logits, *, hard=True,
                            smooth_nr=1e-6, smooth_dr=1e-6,
                            dice_weight=0.0, focal_weight=0.0,
                            focal_gamma=0.0,
                            block_bytes=None):
    assert last_logits.shape == logits.shape
    n, c = last_logits.shape[:2]
    rows = n * c
    cols = 1
    for d in last_logits.shape[2:]:
        cols *= d

    # Lane-dense view: spatial on lanes (last dim), (n, c) rows on sublanes.
    x2 = last_logits.reshape(rows, cols)
    y2 = logits.reshape(rows, cols)

    itemsize = jnp.dtype(x2.dtype).itemsize
    auto_block, vmem_limit = _auto_budget()
    if block_bytes is None:
        block_bytes = auto_block
    vmem_limit = max(vmem_limit, 4 * block_bytes + 8 * 1024 * 1024)

    (r_blk, c_blk, rb_total, cb_total,
     n_split, cb_per_split) = _pick_tiling(rows, cols, itemsize, block_bytes)

    mask_rows = rb_total * r_blk != rows
    mask_cols = n_split * cb_per_split * c_blk != cols

    def in_index(s, i, j):
        cb = s * cb_per_split + j
        if n_split > 1:
            cb = jnp.minimum(cb, cb_total - 1)   # never DMA a fully-OOB tile
        return (i, cb)

    in_spec = pl.BlockSpec((r_blk, c_blk), in_index)
    out_spec = pl.BlockSpec((None, r_blk, 128), lambda s, i, j: (s, i, 0))

    kernel = functools.partial(
        _reg_loss_kernel, hard=hard, gamma=focal_gamma,
        rows=rows, cols=cols, cb_per_split=cb_per_split,
        mask_rows=mask_rows, mask_cols=mask_cols)

    parts = pl.pallas_call(
        kernel,
        out_shape=jax.ShapeDtypeStruct((n_split, rows, 128), jnp.float32),
        grid=(n_split, rb_total, cb_per_split),
        in_specs=[in_spec, in_spec],
        out_specs=out_spec,
        scratch_shapes=[pltpu.VMEM((r_blk, 1), jnp.float32),
                        pltpu.VMEM((r_blk, 1), jnp.float32),
                        pltpu.VMEM((r_blk, 1), jnp.float32)],
        compiler_params=pltpu.CompilerParams(
            dimension_semantics=("parallel", "parallel", "arbitrary"),
            vmem_limit_bytes=vmem_limit),
    )(x2, y2)

    # Glue: combine split partials, per-(n, c) dice then mean; focal mean over
    # all spatial elements.
    parts = jnp.sum(parts, axis=0)               # (rows, 128)
    inter = parts[:, 0]
    denom = parts[:, 1]
    fsum = parts[:, 2]
    dice = jnp.mean(1.0 - (2.0 * inter + smooth_nr) / (denom + smooth_dr))
    focal = jnp.sum(fsum) / float(rows * cols)
    loss = dice_weight * dice + focal_weight * focal
    return loss, dice, focal


def _reference(last_logits, logits, *, hard, smooth_nr, smooth_dr,
               dice_weight, focal_weight, focal_gamma):
    x = last_logits.astype(jnp.float32)
    y = logits.astype(jnp.float32)
    prob = jax.nn.sigmoid(x)
    target = jax.nn.sigmoid(y)
    if hard:
        target = (target > 0.5).astype(jnp.float32)
    axes = tuple(range(2, x.ndim))
    inter = jnp.sum(prob * target, axis=axes)
    denom = jnp.sum(prob, axis=axes) + jnp.sum(target, axis=axes)
    dice = jnp.mean(1.0 - (2.0 * inter + smooth_nr) / (denom + smooth_dr))
    ce = jnp.maximum(x, 0.0) - x * target + jnp.log1p(jnp.exp(-jnp.abs(x)))
    p_t = prob * target + (1.0 - prob) * (1.0 - target)
    focal_el = ce * jnp.power(1.0 - p_t, focal_gamma) if focal_gamma != 0.0 else ce
    focal = jnp.mean(focal_el)
    return dice_weight * dice + focal_weight * focal, dice, focal


if __name__ == "__main__":
    key = jax.random.PRNGKey(0)

    cfg_hard = dict(hard=True, smooth_nr=1e-6, smooth_dr=1e-6,
                    dice_weight=0.4, focal_weight=0.6, focal_gamma=2.0)
    cfg_soft = dict(hard=False, smooth_nr=1e-6, smooth_dr=1e-6,
                    dice_weight=1.0, focal_weight=0.5, focal_gamma=0.0)

    # (shape, cfg, block_bytes): small block_bytes on the latter cases forces
    # multi-block tiling with ragged row/column tails and the 2-way
    # column-reduction split, exercising the in-kernel masking paths.
    tests = [
        ((2, 4, 16, 16), cfg_hard, None),
        ((2, 4, 16, 16), cfg_soft, None),
        ((3, 5, 24, 24), cfg_hard, 8 * 256 * 4),   # ragged rows + cols
        ((2, 4, 24, 24), cfg_hard, 8 * 256 * 4),   # 2-way reduction split
    ]

    for idx, (shape, cfg, bb) in enumerate(tests):
        k1, k2 = jax.random.split(jax.random.fold_in(key, idx))
        last_logits = jax.random.normal(k1, shape, dtype=jnp.float32) * 2.0
        logits = jax.random.normal(k2, shape, dtype=jnp.float32) * 2.0

        out = adjacent_layer_reg_loss(last_logits, logits, block_bytes=bb, **cfg)
        out = jax.block_until_ready(out)

        ref = _reference(last_logits, logits, **cfg)
        for got, want in zip(out, ref):
            assert jnp.allclose(got, want, atol=1e-5, rtol=1e-5), (shape, got, want)

    print("KERNEL_OK")
</pallas_src>

<mosaic_0001>
module attributes {stable_mosaic.version = 11 : i64} {
  func.func @_reg_loss_kernel(%arg0: i32, %arg1: i32, %arg2: i32, %arg3: memref<8x256xf32, #tpu.memory_space<vmem>>, %arg4: memref<8x256xf32, #tpu.memory_space<vmem>>, %arg5: memref<1x8x128xf32, #tpu.memory_space<vmem>>, %arg6: memref<8x1xf32, #tpu.memory_space<vmem>>, %arg7: memref<8x1xf32, #tpu.memory_space<vmem>>, %arg8: memref<8x1xf32, #tpu.memory_space<vmem>>) attributes {dimension_semantics = [#tpu.dimension_semantics<parallel>, #tpu.dimension_semantics<parallel>, #tpu.dimension_semantics<arbitrary>], iteration_bounds = array<i64: 1, 1, 1>, scalar_prefetch = 0 : i64, scratch_operands = 3 : i64, tpu.core_type = #tpu.core_type<tc>, window_params = [{transform_indices = @transform_0, window_bounds = array<i64: 8, 256>}, {transform_indices = @transform_1, window_bounds = array<i64: 8, 256>}, {transform_indices = @transform_2, window_bounds = array<i64: 1, 8, 128>}]} {
    %c0_i32 = arith.constant 0 : i32
    %0 = arith.cmpi eq, %arg2, %c0_i32 : i32
    %1 = arith.extui %0 : i1 to i32
    %c0_i32_0 = arith.constant 0 : i32
    %2 = arith.cmpi ne, %1, %c0_i32_0 : i32
    scf.if %2 {
      %cst_27 = arith.constant 0.000000e+00 : f32
      %54 = vector.broadcast %cst_27 : f32 to vector<8x1xf32>
      %c0_28 = arith.constant 0 : index
      %c0_29 = arith.constant 0 : index
      %55 = vector.load %arg6[%c0_28, %c0_29] : memref<8x1xf32, #tpu.memory_space<vmem>>, vector<8x1xf32>
      tpu.vector_store %arg6[%c0_28, %c0_29], %54 {strides = array<i32>} : memref<8x1xf32, #tpu.memory_space<vmem>>, vector<8x1xf32>,
      %cst_30 = arith.constant 0.000000e+00 : f32
      %56 = vector.broadcast %cst_30 : f32 to vector<8x1xf32>
      %c0_31 = arith.constant 0 : index
      %c0_32 = arith.constant 0 : index
      %57 = vector.load %arg7[%c0_31, %c0_32] : memref<8x1xf32, #tpu.memory_space<vmem>>, vector<8x1xf32>
      tpu.vector_store %arg7[%c0_31, %c0_32], %56 {strides = array<i32>} : memref<8x1xf32, #tpu.memory_space<vmem>>, vector<8x1xf32>,
      %cst_33 = arith.constant 0.000000e+00 : f32
      %58 = vector.broadcast %cst_33 : f32 to vector<8x1xf32>
      %c0_34 = arith.constant 0 : index
      %c0_35 = arith.constant 0 : index
      %59 = vector.load %arg8[%c0_34, %c0_35] : memref<8x1xf32, #tpu.memory_space<vmem>>, vector<8x1xf32>
      tpu.vector_store %arg8[%c0_34, %c0_35], %58 {strides = array<i32>} : memref<8x1xf32, #tpu.memory_space<vmem>>, vector<8x1xf32>,
    } else {
    }
    %c0 = arith.constant 0 : index
    %c0_1 = arith.constant 0 : index
    %3 = vector.load %arg3[%c0, %c0_1] : memref<8x256xf32, #tpu.memory_space<vmem>>, vector<8x256xf32>
    %c0_2 = arith.constant 0 : index
    %c0_3 = arith.constant 0 : index
    %4 = vector.load %arg4[%c0_2, %c0_3] : memref<8x256xf32, #tpu.memory_space<vmem>>, vector<8x256xf32>
    %5 = arith.negf %3 : vector<8x256xf32>
    %6 = math.exp %5 : vector<8x256xf32>
    %cst = arith.constant 1.000000e+00 : f32
    %7 = vector.broadcast %cst : f32 to vector<8x256xf32>
    %8 = arith.addf %7, %6 : vector<8x256xf32>
    %9 = arith.divf %7, %8 : vector<8x256xf32>
    %cst_4 = arith.constant 0.000000e+00 : f32
    %10 = vector.broadcast %cst_4 : f32 to vector<8x256xf32>
    %11 = arith.cmpf ogt, %4, %10 : vector<8x256xf32>
    %12 = arith.extui %11 : vector<8x256xi1> to vector<8x256xi32>
    %13 = arith.sitofp %12 : vector<8x256xi32> to vector<8x256xf32>
    %c0_5 = arith.constant 0 : index
    %c0_6 = arith.constant 0 : index
    %14 = vector.load %arg6[%c0_5, %c0_6] : memref<8x1xf32, #tpu.memory_space<vmem>>, vector<8x1xf32>
    %15 = arith.mulf %9, %13 : vector<8x256xf32>
    %cst_7 = arith.constant dense<0.000000e+00> : vector<8xf32>
    %16 = vector.multi_reduction <add>, %15, %cst_7 [1] : vector<8x256xf32> to vector<8xf32>
    %17 = vector.shape_cast %16 : vector<8xf32> to vector<8x1xf32>
    %18 = arith.addf %14, %17 : vector<8x1xf32>
    %c0_8 = arith.constant 0 : index
    %c0_9 = arith.constant 0 : index
    %19 = vector.load %arg6[%c0_8, %c0_9] : memref<8x1xf32, #tpu.memory_space<vmem>>, vector<8x1xf32>
    tpu.vector_store %arg6[%c0_8, %c0_9], %18 {strides = array<i32>} : memref<8x1xf32, #tpu.memory_space<vmem>>, vector<8x1xf32>,
    %c0_10 = arith.constant 0 : index
    %c0_11 = arith.constant 0 : index
    %20 = vector.load %arg7[%c0_10, %c0_11] : memref<8x1xf32, #tpu.memory_space<vmem>>, vector<8x1xf32>
    %21 = arith.addf %9, %13 : vector<8x256xf32>
    %cst_12 = arith.constant dense<0.000000e+00> : vector<8xf32>
    %22 = vector.multi_reduction <add>, %21, %cst_12 [1] : vector<8x256xf32> to vector<8xf32>
    %23 = vector.shape_cast %22 : vector<8xf32> to vector<8x1xf32>
    %24 = arith.addf %20, %23 : vector<8x1xf32>
    %c0_13 = arith.constant 0 : index
    %c0_14 = arith.constant 0 : index
    %25 = vector.load %arg7[%c0_13, %c0_14] : memref<8x1xf32, #tpu.memory_space<vmem>>, vector<8x1xf32>
    tpu.vector_store %arg7[%c0_13, %c0_14], %24 {strides = array<i32>} : memref<8x1xf32, #tpu.memory_space<vmem>>, vector<8x1xf32>,
    %cst_15 = arith.constant 0.000000e+00 : f32
    %26 = vector.broadcast %cst_15 : f32 to vector<8x256xf32>
    %27 = arith.maximumf %3, %26 : vector<8x256xf32>
    %28 = arith.mulf %3, %13 : vector<8x256xf32>
    %29 = arith.subf %27, %28 : vector<8x256xf32>
    %cst_16 = arith.constant 1.000000e+00 : f32
    %30 = vector.broadcast %cst_16 : f32 to vector<8x256xf32>
    %31 = arith.subf %30, %9 : vector<8x256xf32>
    %32 = arith.maximumf %9, %31 : vector<8x256xf32>
    %33 = math.log %32 : vector<8x256xf32>
    %34 = arith.subf %29, %33 : vector<8x256xf32>
    %35 = arith.mulf %9, %13 : vector<8x256xf32>
    %cst_17 = arith.constant 1.000000e+00 : f32
    %36 = vector.broadcast %cst_17 : f32 to vector<8x256xf32>
    %37 = arith.subf %36, %9 : vector<8x256xf32>
    %cst_18 = arith.constant 1.000000e+00 : f32
    %38 = vector.broadcast %cst_18 : f32 to vector<8x256xf32>
    %39 = arith.subf %38, %13 : vector<8x256xf32>
    %40 = arith.mulf %37, %39 : vector<8x256xf32>
    %41 = arith.addf %35, %40 : vector<8x256xf32>
    %cst_19 = arith.constant 1.000000e+00 : f32
    %42 = vector.broadcast %cst_19 : f32 to vector<8x256xf32>
    %43 = arith.subf %42, %41 : vector<8x256xf32>
    %44 = arith.mulf %43, %43 : vector<8x256xf32>
    %45 = arith.mulf %34, %44 : vector<8x256xf32>
    %c0_20 = arith.constant 0 : index
    %c0_21 = arith.constant 0 : index
    %46 = vector.load %arg8[%c0_20, %c0_21] : memref<8x1xf32, #tpu.memory_space<vmem>>, vector<8x1xf32>
    %cst_22 = arith.constant dense<0.000000e+00> : vector<8xf32>
    %47 = vector.multi_reduction <add>, %45, %cst_22 [1] : vector<8x256xf32> to vector<8xf32>
    %48 = vector.shape_cast %47 : vector<8xf32> to vector<8x1xf32>
    %49 = arith.addf %46, %48 : vector<8x1xf32>
    %c0_23 = arith.constant 0 : index
    %c0_24 = arith.constant 0 : index
    %50 = vector.load %arg8[%c0_23, %c0_24] : memref<8x1xf32, #tpu.memory_space<vmem>>, vector<8x1xf32>
    tpu.vector_store %arg8[%c0_23, %c0_24], %49 {strides = array<i32>} : memref<8x1xf32, #tpu.memory_space<vmem>>, vector<8x1xf32>,
    %c0_i32_25 = arith.constant 0 : i32
    %51 = arith.cmpi eq, %arg2, %c0_i32_25 : i32
    %52 = arith.extui %51 : i1 to i32
    %c0_i32_26 = arith.constant 0 : i32
    %53 = arith.cmpi ne, %52, %c0_i32_26 : i32
    scf.if %53 {
      %54 = tpu.iota {dimensions = array<i32: 1>} : vector<8x128xi32>
      %c0_i32_27 = arith.constant 0 : i32
      %55 = vector.broadcast %c0_i32_27 : i32 to vector<8x128xi32>
      %56 = arith.cmpi eq, %54, %55 : vector<8x128xi32>
      %c0_28 = arith.constant 0 : index
      %c0_29 = arith.constant 0 : index
      %57 = vector.load %arg6[%c0_28, %c0_29] : memref<8x1xf32, #tpu.memory_space<vmem>>, vector<8x1xf32>
      %c1_i32 = arith.constant 1 : i32
      %58 = vector.broadcast %c1_i32 : i32 to vector<8x128xi32>
      %59 = arith.cmpi eq, %54, %58 : vector<8x128xi32>
      %c0_30 = arith.constant 0 : index
      %c0_31 = arith.constant 0 : index
      %60 = vector.load %arg7[%c0_30, %c0_31] : memref<8x1xf32, #tpu.memory_space<vmem>>, vector<8x1xf32>
      %c2_i32 = arith.constant 2 : i32
      %61 = vector.broadcast %c2_i32 : i32 to vector<8x128xi32>
      %62 = arith.cmpi eq, %54, %61 : vector<8x128xi32>
      %c0_32 = arith.constant 0 : index
      %c0_33 = arith.constant 0 : index
      %63 = vector.load %arg8[%c0_32, %c0_33] : memref<8x1xf32, #tpu.memory_space<vmem>>, vector<8x1xf32>
      %cst_34 = arith.constant 0.000000e+00 : f32
      %64 = vector.shape_cast %63 : vector<8x1xf32> to vector<8x1xf32>
      %65 = vector.broadcast %64 : vector<8x1xf32> to vector<8x128xf32>
      %66 = vector.broadcast %cst_34 : f32 to vector<8x128xf32>
      %67 = arith.select %62, %65, %66 : vector<8x128xi1>, vector<8x128xf32>
      %68 = vector.shape_cast %60 : vector<8x1xf32> to vector<8x1xf32>
      %69 = vector.broadcast %68 : vector<8x1xf32> to vector<8x128xf32>
      %70 = arith.select %59, %69, %67 : vector<8x128xi1>, vector<8x128xf32>
      %71 = vector.shape_cast %57 : vector<8x1xf32> to vector<8x1xf32>
      %72 = vector.broadcast %71 : vector<8x1xf32> to vector<8x128xf32>
      %73 = arith.select %56, %72, %70 : vector<8x128xi1>, vector<8x128xf32>
      %c0_35 = arith.constant 0 : index
      %c0_36 = arith.constant 0 : index
      %c0_37 = arith.constant 0 : index
      %74 = vector.load %arg5[%c0_35, %c0_36, %c0_37] : memref<1x8x128xf32, #tpu.memory_space<vmem>>, vector<1x8x128xf32>
      %75 = vector.shape_cast %74 : vector<1x8x128xf32> to vector<8x128xf32>
      %76 = vector.shape_cast %73 : vector<8x128xf32> to vector<1x8x128xf32>
      tpu.vector_store %arg5[%c0_35, %c0_36, %c0_37], %76 {strides = array<i32>} : memref<1x8x128xf32, #tpu.memory_space<vmem>>, vector<1x8x128xf32>,
    } else {
    }
    return
  }
  func.func @transform_0(%arg0: i32, %arg1: i32, %arg2: i32) -> (i32, i32) {
    %c1_i32 = arith.constant 1 : i32
    %0 = arith.muli %arg0, %c1_i32 : i32
    %1 = arith.addi %0, %arg2 : i32
    %c0_i32 = arith.constant 0 : i32
    return %arg1, %1 : i32, i32
  }
  func.func @transform_1(%arg0: i32, %arg1: i32, %arg2: i32) -> (i32, i32) {
    %c1_i32 = arith.constant 1 : i32
    %0 = arith.muli %arg0, %c1_i32 : i32
    %1 = arith.addi %0, %arg2 : i32
    %c0_i32 = arith.constant 0 : i32
    return %arg1, %1 : i32, i32
  }
  func.func @transform_2(%arg0: i32, %arg1: i32, %arg2: i32) -> (i32, i32, i32) {
    %c0_i32 = arith.constant 0 : i32
    %c0_i32_0 = arith.constant 0 : i32
    return %arg0, %arg1, %c0_i32 : i32, i32, i32
  }
}

</mosaic_0001>

<bundles_post_ra>
// kernel: tpu_custom_call.1
= control target key start
LH: loop header
LB: loop body
LE: loop exit
PB: predicated region body
PF: predicated region fallthrough
CT: control target
= control target key end

     0   :  { %7 = vsyncpa [#allocation6], 0  ;;  %s332_s0 = inlined_call_operand.hbm [shape: f32[8,256], index: 0, kind: input, shape index: {}]   ;;  %s333_s1 = inlined_call_operand.hbm [shape: f32[8,256], index: 1, kind: input, shape index: {}]   ;;  %s334_s2 = inlined_call_operand.hbm [shape: f32[1,8,128], index: 2, kind: output, shape index: {}]  }
   0x1   :  { %8 = vsyncpa [#allocation9], 0 }
   0x2   :  { %9 = vsyncpa [#allocation7], 0  ;;  %s270_s9 = smov [#allocation5]   ;;  %s271_s11 = smov [#allocation8]  }
   0x3   :  { %s20_s10 = sshll.u32 %s270_s9, 4  ;;  %s34_s12 = sshll.u32 %s271_s11, 4  ;;  %s21_s10 = int_to_ptr.vmem [resolvable:$true] %s20_s10  ;;  %s35_s12 = int_to_ptr.vmem [resolvable:$true] %s34_s12 }
   0x4   :  { %s198_s15 = scalar_lea.hbm %s332_s0, 256 }
   0x5   :  { %p199_p0 = scmp.ne.s32.totalorder %s332_s0, %s198_s15  ;;  %p202_p1 = scmp.lt.u32.totalorder %s198_s15, %s332_s0 }
   0x7   :  { %p204_p2 = pnand %p202_p1, %p199_p0 }
   0x9   :  { %207 = shalt.err (!%p204_p2)
}
   0xa   :  { %s208_s20 = scalar_lea.vmem %s21_s10, 256  ;;  %p213_p4 = scmp.lt.s32.totalorder %s21_s10, %s21_s10 }
   0xb   :  { %p209_p3 = scmp.ne.s32.totalorder %s21_s10, %s208_s20  ;;  %p214_p5 = scmp.lt.s32.totalorder %s208_s20, %s208_s20 }
   0xd   :  { %p215_p6 = por %p214_p5, %p213_p4 }
   0xf   :  { %p216_p7 = pnand %p215_p6, %p209_p3 }
  0x11   :  { %219 = shalt.err (!%p216_p7)
}
  0x12   :  { %23 = dma.hbm_to_vmem [thread:$0]  %s332_s0, 256, %s21_s10, [#allocation6]  }
  0x13   :  { %s220_s25 = scalar_lea.hbm %s333_s1, 256 }
  0x14   :  { %p221_p8 = scmp.ne.s32.totalorder %s333_s1, %s220_s25  ;;  %p224_p9 = scmp.lt.u32.totalorder %s220_s25, %s333_s1 }
  0x16   :  { %p226_p10 = pnand %p224_p9, %p221_p8 }
  0x18   :  { %229 = shalt.err (!%p226_p10)
}
  0x19   :  { %s230_s30 = scalar_lea.vmem %s35_s12, 256  ;;  %p235_p12 = scmp.lt.s32.totalorder %s35_s12, %s35_s12 }
  0x1a   :  { %p231_p11 = scmp.ne.s32.totalorder %s35_s12, %s230_s30  ;;  %p236_p13 = scmp.lt.s32.totalorder %s230_s30, %s230_s30 }
  0x1c   :  { %p237_p0 = por %p236_p13, %p235_p12 }
  0x1e   :  { %p238_p1 = pnand %p237_p0, %p231_p11 }
  0x20   :  { %241 = shalt.err (!%p238_p1)
}
  0x21   :  { %37 = dma.hbm_to_vmem [thread:$0]  %s333_s1, 256, %s35_s12, [#allocation9]  }
  0x22   :  { %264 = dma.done.wait [#allocation6], 256  }
  0x23   :  { %265 = vsyncadd [#allocation6], 4294967040 }
  0x24   :  { %266 = dma.done.wait [#allocation9], 256  }
  0x25   :  { %267 = vsyncadd [#allocation9], 4294967040  ;;  %vm52_vm0 = vcmask 7168   ;;  %v272_v0 = vmov 0.0   ;;  %v56_v1 = vld [vmem:[#allocation5] sm:$0xff]  ;;  %v57_v2 = vld [vmem:[#allocation5 + $0x8] sm:$0xff]  ;;  %v132_v63 = vlaneseq }
  0x26   :  { %55 = vst.msk [vmem:[#allocation4] sm:$0xff] %vm52_vm0, %v272_v0  ;;  %53 = vst.msk [vmem:[#allocation2] sm:$0xff] %vm52_vm0, %v272_v0  ;;  %v175_v3 = vmul.f32 -1.442695, %v56_v1  ;;  %v176_v4 = vmul.f32 -1.442695, %v57_v2 }
  0x27   :  { %54 = vst.msk [vmem:[#allocation3] sm:$0xff] %vm52_vm0, %v272_v0  ;;  %v58_v9 = vld [vmem:[#allocation8] sm:$0xff]  ;;  %v59_v10 = vld [vmem:[#allocation8 + $0x8] sm:$0xff]  ;;  %v95_v28 = vmax.f32 %v56_v1, 0.0  ;;  %v96_v30 = vmax.f32 %v57_v2, 0.0  ;;  %v273_v50 = vmov 0  }
  0x28   :  { %186 = vpow2.f32 %v175_v3  ;;  %vm72_vm1 = vcmp.gt.f32.partialorder %v58_v9, 0.0  ;;  %vm73_vm2 = vcmp.gt.f32.partialorder %v59_v10, 0.0  ;;  %184 = vset.pattern.permute.xlu1 %v273_v50  ;;  %185 = vset.pattern.permute.xlu0 %v273_v50  ;;  %s274_s1 = smov [#allocation10]  }
  0x29   :  { %188 = vpow2.f32 %v176_v4  ;;  %v177_v11 = vsel %vm72_vm1, 1.0, %v272_v0  ;;  %v178_v12 = vsel %vm73_vm2, 1.0, %v272_v0  ;;  %v133_v0 = vand.u32 127, %v132_v63  ;;  %s165_s4 = sshll.u32 %s274_s1, 4  ;;  %s166_s4 = int_to_ptr.vmem [resolvable:$true] %s165_s4 }
  0x2a   :  { %v111_v14 = vsub.f32 1.0, %v177_v11  ;;  %v112_v17 = vsub.f32 1.0, %v178_v12  ;;  %v97_v29 = vmul.f32 %v177_v11, %v56_v1  ;;  %v98_v31 = vmul.f32 %v178_v12, %v57_v2  ;;  %s242_s5 = scalar_lea.vmem %s166_s4, 128  ;;  %p247_p3 = scmp.lt.s32.totalorder %s166_s4, %s166_s4 }
  0x2b   :  { %vm138_vm3 = vcmp.eq.s32.totalorder %v133_v0, 2  ;;  %vm136_vm4 = vcmp.eq.s32.totalorder %v133_v0, 1  ;;  %vm134_vm5 = vcmp.eq.s32.totalorder %v133_v0, 0  ;;  %p243_p2 = scmp.ne.s32.totalorder %s166_s4, %s242_s5  ;;  %p248_p4 = scmp.lt.s32.totalorder %s242_s5, %s242_s5 }
  0x2c   :  { %v99_v34 = vsub.f32 %v95_v28, %v97_v29  ;;  %v100_v36 = vsub.f32 %v96_v30, %v98_v31 }
  0x2d   :  { %v78_v51 = vld [vmem:[#allocation2] sm:$0xff]  ;;  %v123_v54 = vld [vmem:[#allocation4] sm:$0xff]  ;;  %p249_p5 = por %p248_p4, %p247_p3 }
  0x2e   :  { %v87_v57 = vld [vmem:[#allocation3] sm:$0xff] }
  0x2f   :  { %p250_p6 = pnand %p249_p5, %p243_p2 }
  0x32   :  { %v187_v5 = vpop.eup %186 }
  0x33   :  { %v189_v6 = vpop.eup %188  ;;  %v66_v7 = vadd.f32 1.0, %v187_v5 }
  0x34   :  { %v67_v8 = vadd.f32 1.0, %v189_v6 }
  0x35   :  { %190 = vrcp.f32 %v66_v7 }
  0x36   :  { %192 = vrcp.f32 %v67_v8 }
  0x3f   :  { %v191_v13 = vpop.eup %190 }
  0x40   :  { %v193_v15 = vpop.eup %192  ;;  %v101_v16 = vsub.f32 1.0, %v191_v13  ;;  %v79_v18 = vmul.f32 %v191_v13, %v177_v11  ;;  %v88_v46 = vadd.f32 %v191_v13, %v177_v11 }
  0x41   :  { %v80_v19 = vmul.f32 %v193_v15, %v178_v12  ;;  %v102_v20 = vsub.f32 1.0, %v193_v15  ;;  %v89_v47 = vadd.f32 %v193_v15, %v178_v12 }
  0x42   :  { %v103_v21 = vmax.f32 %v191_v13, %v101_v16  ;;  %v113_v23 = vmul.f32 %v111_v14, %v101_v16 }
  0x43   :  { %v104_v22 = vmax.f32 %v193_v15, %v102_v20  ;;  %v81_v24 = vadd.f32 %v80_v19, %v79_v18  ;;  %v114_v25 = vmul.f32 %v112_v17, %v102_v20  ;;  %v90_v49 = vadd.f32 %v89_v47, %v88_v46 }
  0x44   :  { %194 = vlog2.f32 %v103_v21  ;;  %v115_v26 = vadd.f32 %v113_v23, %v79_v18 }
  0x45   :  { %196 = vlog2.f32 %v104_v22  ;;  %82 = vadd.xlane.f32.xlu1 %v81_v24  ;;  %v116_v27 = vadd.f32 %v114_v25, %v80_v19 }
  0x46   :  { %v117_v32 = vsub.f32 1.0, %v115_v26 }
  0x47   :  { %v118_v33 = vsub.f32 1.0, %v116_v27 }
  0x48   :  { %v119_v39 = vmul.f32 %v117_v32, %v117_v32 }
  0x49   :  { %v120_v41 = vmul.f32 %v118_v33, %v118_v33 }
  0x4e   :  { %v195_v35 = vpop.eup %194 }
  0x4f   :  { %v197_v37 = vpop.eup %196  ;;  %v106_v38 = vmul.f32 0.6931472, %v195_v35 }
  0x50   :  { %v108_v40 = vmul.f32 0.6931472, %v197_v37 }
  0x51   :  { %v109_v42 = vsub.f32 %v99_v34, %v106_v38 }
  0x52   :  { %v110_v43 = vsub.f32 %v100_v36, %v108_v40 }
  0x53   :  { %v121_v44 = vmul.f32 %v119_v39, %v109_v42 }
  0x54   :  { %v122_v45 = vmul.f32 %v120_v41, %v110_v43 }
  0x56   :  { %v124_v48 = vadd.f32 %v122_v45, %v121_v44 }
  0x58   :  { %125 = vadd.xlane.f32.xlu0 %v124_v48 }
  0x5c   :  { %91 = vadd.xlane.f32.xlu0 %v90_v49 }
  0xd2   :  { %v83_v52 = vpop.xlane.xlu1 %82 }
  0xd3   :  { %v84_v53 = vadd.f32 %v83_v52, %v78_v51 }
  0xd5   :  { %86 = vst.msk [vmem:[#allocation2] sm:$0xff] %vm52_vm0, %v84_v53 }
  0xdc   :  { %v135_v61 = vld [vmem:[#allocation2] sm:$0xff] }
  0xe5   :  { %v126_v55 = vpop.xlane.xlu0 %125 }
  0xe6   :  { %v127_v56 = vadd.f32 %v126_v55, %v123_v54 }
  0xe8   :  { %128 = vst.msk [vmem:[#allocation4] sm:$0xff] %vm52_vm0, %v127_v56 }
  0xe9   :  { %v92_v58 = vpop.xlane.xlu0 %91 }
  0xea   :  { %v93_v59 = vadd.f32 %v92_v58, %v87_v57 }
  0xec   :  { %94 = vst.msk [vmem:[#allocation3] sm:$0xff] %vm52_vm0, %v93_v59 }
  0xef   :  { %v139_v60 = vld [vmem:[#allocation4] sm:$0xff] }
  0xf0   :  { %142 = vperm.xlu1 %184, %v139_v60  }
  0xf3   :  { %v137_v62 = vld [vmem:[#allocation3] sm:$0xff] }
  0xf4   :  { %148 = vperm.xlu0 %185, %v137_v62   ;;  %154 = vperm.xlu1 %184, %v135_v61  }
 0x16f   :  { %v143_v1 = vpop.permute.xlu1 %142 }
 0x170   :  { %v145_v2 = vsel %vm138_vm3, %v143_v1, 0.0 }
 0x173   :  { %v149_v3 = vpop.permute.xlu0 %148  ;;  %v155_v4 = vpop.permute.xlu1 %154 }
 0x174   :  { %v151_v5 = vsel %vm136_vm4, %v149_v3, %v145_v2 }
 0x175   :  { %v157_v6 = vsel %vm134_vm5, %v155_v4, %v151_v5 }
 0x176   :  { %158 = vst [vmem:[#allocation10] sm:$0xff] %v157_v6 }
 0x177   :  { %253 = shalt.err (!%p250_p6)
}
 0x178   :  { %s254_s8 = scalar_lea.hbm %s334_s2, 128 }
 0x179   :  { %p255_p7 = scmp.ne.s32.totalorder %s334_s2, %s254_s8  ;;  %p258_p8 = scmp.lt.u32.totalorder %s254_s8, %s334_s2 }
 0x17b   :  { %p260_p9 = pnand %p258_p8, %p255_p7 }
 0x17d   :  { %263 = shalt.err (!%p260_p9)
}
 0x17e   :  { %168 = dma.vmem_to_hbm [thread:$0]  %s166_s4, 128, %s334_s2, [#allocation7]  }
 0x17f   :  { %268 = dma.done.wait [#allocation7], 128  }
 0x180   :  { %269 = vsyncadd [#allocation7], 4294967168 }
 0x181   :  { %172 = vsyncpa [#allocation6], 1 }
 0x182   :  { %173 = vsyncpa [#allocation9], 1 }
 0x183   :  { %174 = vsyncpa [#allocation7], 1 }

</bundles_post_ra>
